<compile_context>
chip_gen: v6e
topology: v6e:2x2x1
jax: 0.10.0
libtpu: 0.0.40
codegen_flags: <defaults>
</compile_context>

<pallas_src>
import functools
import math

import jax
import jax.numpy as jnp
from jax.experimental import pallas as pl
from jax.experimental.pallas import tpu as pltpu


_LANE = 128                     # lane width of a vreg (last-dim quantum)
_MIN_GRID_STEPS = 8             # >= v7x TC count (2) * 4 so megacore engages
_MIN_BLOCK_BYTES = 512 * 1024   # don't split blocks below this (step overhead)

try:                            # memory-space enum spelling differs across versions
    _SMEM = pltpu.MemorySpace.SMEM
except AttributeError:          # pragma: no cover - older pltpu alias
    _SMEM = pltpu.SMEM


def _cdiv(a, b):
    return -(-a // b)


def _round_up(v, m):
    return _cdiv(v, m) * m


def _sublane_quantum(dtype):
    # Sub-32-bit dtypes pack along sublanes: 8 rows (f32), 16 (bf16), 32 (int8).
    return max(8, 32 // jnp.dtype(dtype).itemsize)


@functools.lru_cache(maxsize=None)
def _vmem_budget():
    """Generation-aware (block_bytes, vmem_limit_bytes), queried at trace time."""
    phys = None
    try:
        info = pltpu.get_tpu_info()
        for name in ("vmem_capacity_bytes", "vmem_bytes", "vmem_size_bytes"):
            v = getattr(info, name, None)
            if isinstance(v, int) and v > 0:
                phys = v
                break
    except Exception:
        phys = None
    if not phys:
        phys = 64 * 1024 * 1024          # conservative (v7x per-TC); safe on all gens
    vmem_limit = min((phys * 3) // 4, 96 * 1024 * 1024)   # v5e/v6e: 96 MiB, v7x: 48 MiB
    block_bytes = min(vmem_limit // 8, 8 * 1024 * 1024)   # live ~= 4x block <= limit/2
    return block_bytes, vmem_limit


def _pick_tiles(rows, cols, itemsize, row_quantum, block_bytes):
    """VMEM-budgeted (tr, tc): multiples of (row_quantum, 128) or full extent,
    split into enough grid steps for megacore sharding when blocks stay big."""
    if cols >= _LANE:
        tc_cap = max(_LANE, ((block_bytes // (row_quantum * itemsize)) // _LANE) * _LANE)
        tc = min(tc_cap, _round_up(cols, _LANE))
    else:
        tc = cols                         # lane-sparse fallback (tiny odd shapes only)
    if rows >= row_quantum:
        tr_cap = max(row_quantum,
                     ((block_bytes // (tc * itemsize)) // row_quantum) * row_quantum)
        tr = min(tr_cap, _round_up(rows, row_quantum))
    else:
        tr = rows                         # sublane-sparse fallback (tiny inputs only)
    # Guarantee enough grid steps for megacore sharding (v7x: 2 TCs), provided
    # blocks stay large enough to amortize the ~0.35 us per-step overhead.
    while (_cdiv(rows, tr) * _cdiv(cols, tc) < _MIN_GRID_STEPS
           and tr > row_quantum
           and (tr // 2) * tc * itemsize >= _MIN_BLOCK_BYTES):
        tr = max(row_quantum, _round_up(tr // 2, row_quantum))
    while (_cdiv(rows, tr) * _cdiv(cols, tc) < _MIN_GRID_STEPS
           and tc > _LANE
           and tr * (tc // 2) * itemsize >= _MIN_BLOCK_BYTES):
        tc = max(_LANE, _round_up(tc // 2, _LANE))
    return tr, tc


# --------------------------------------------------------------------------
# Kernels
# --------------------------------------------------------------------------

def _swish_vec_kernel(x_ref, b_ref, o_ref):
    # x_ref: (tr, tc);  b_ref: (gb, tc) with gb == 1 or gb | tr (gb a multiple
    # of the native sublane tile).  beta varies along the lane (last) dim and,
    # when gb > 1, periodically along sublanes.
    x = x_ref[...]
    b = b_ref[...]
    gb, tr = b.shape[0], x.shape[0]
    if gb > 1 and gb != tr:
        # Tile-aligned sublane concatenation (small, hidden under the DMA stream).
        b = jnp.concatenate([b] * (tr // gb), axis=0)
    o_ref[...] = (x * jax.nn.sigmoid(b * x)).astype(o_ref.dtype)


def _swish_scalar_kernel(b_ref, x_ref, o_ref):
    # b_ref: (1,) f32 scalar in SMEM (dim <= 0 path) -- no beta row is streamed.
    x = x_ref[...]
    b = b_ref[0].astype(x.dtype)
    o_ref[...] = (x * jax.nn.sigmoid(b * x)).astype(o_ref.dtype)


# --------------------------------------------------------------------------
# pallas_call launchers
# --------------------------------------------------------------------------

def _launch_vector(x2, b_grp):
    """x2: (R, Dc); b_grp: (g, Dc) with beta pattern of row-period g (g=1 common)."""
    R, Dc = x2.shape
    g = b_grp.shape[0]
    itemsize = x2.dtype.itemsize
    sub = _sublane_quantum(x2.dtype)
    if g > 1:
        # Pre-tile the beta period up to the native sublane quantum so any
        # further in-kernel tiling works on tile-aligned slabs only.
        row_q = (sub * g) // math.gcd(sub, g)        # lcm(sub, g); wrapper keeps <= R
        if row_q > g:
            b_grp = jnp.tile(b_grp, (row_q // g, 1))
        gb = row_q
    else:
        row_q, gb = sub, 1
    block_bytes, vmem_limit = _vmem_budget()
    tr, tc = _pick_tiles(R, Dc, itemsize, row_q, block_bytes)
    # Column blocks OUTER -> the (gb, tc) beta block only changes (and is only
    # re-fetched) once per column sweep; rows stream through x on the inner axis.
    grid = (_cdiv(Dc, tc), _cdiv(R, tr))
    return pl.pallas_call(
        _swish_vec_kernel,
        out_shape=jax.ShapeDtypeStruct((R, Dc), x2.dtype),
        grid_spec=pltpu.PrefetchScalarGridSpec(
            num_scalar_prefetch=0,
            grid=grid,
            in_specs=[
                pl.BlockSpec((tr, tc), lambda j, i: (i, j)),
                pl.BlockSpec((gb, tc), lambda j, i: (0, j)),
            ],
            out_specs=pl.BlockSpec((tr, tc), lambda j, i: (i, j)),
        ),
        compiler_params=pltpu.CompilerParams(
            dimension_semantics=("parallel", "parallel"),
            vmem_limit_bytes=vmem_limit,
        ),
    )(x2, b_grp)


def _launch_scalar(x2, b_scalar):
    """x2: (R, Dc); b_scalar: (1,) f32 passed through SMEM (uniform beta)."""
    R, Dc = x2.shape
    itemsize = x2.dtype.itemsize
    sub = _sublane_quantum(x2.dtype)
    block_bytes, vmem_limit = _vmem_budget()
    tr, tc = _pick_tiles(R, Dc, itemsize, sub, block_bytes)
    grid = (_cdiv(Dc, tc), _cdiv(R, tr))
    return pl.pallas_call(
        _swish_scalar_kernel,
        out_shape=jax.ShapeDtypeStruct((R, Dc), x2.dtype),
        grid_spec=pltpu.PrefetchScalarGridSpec(
            num_scalar_prefetch=0,
            grid=grid,
            in_specs=[
                pl.BlockSpec(memory_space=_SMEM),          # (1,) beta scalar
                pl.BlockSpec((tr, tc), lambda j, i: (i, j)),
            ],
            out_specs=pl.BlockSpec((tr, tc), lambda j, i: (i, j)),
        ),
        compiler_params=pltpu.CompilerParams(
            dimension_semantics=("parallel", "parallel"),
            vmem_limit_bytes=vmem_limit,
        ),
    )(b_scalar, x2)


# --------------------------------------------------------------------------
# Layout helpers + public entry point
# --------------------------------------------------------------------------

def _scalar_layout(shape, sub):
    """Lane/sublane-dense 2-D view for the uniform (scalar beta) path."""
    total = math.prod(shape)
    if total % _LANE == 0:
        rows, cols = total // _LANE, _LANE
        # Widen the lane dim while keeping >= `sub` rows (denser stores/DMAs).
        while cols < 4096 and rows % 2 == 0 and rows // 2 >= sub:
            rows //= 2
            cols *= 2
        return rows, cols
    if len(shape) == 2:
        return shape
    return shape[0], total // shape[0]


def _swish_rows_features(x2, b_vec):
    """x2: (R, D) with per-column beta b_vec: (D,).  Keeps stores lane-dense."""
    R, D = x2.shape
    if D % _LANE == 0:
        return _launch_vector(x2, b_vec.reshape(1, D))
    # Lane-dense fold: (R, D) -> (R/k, k*D) so stores are unmasked; zero-pad R
    # to a multiple of k when needed (padded rows are dropped afterwards).
    k = _LANE // math.gcd(D, _LANE)
    pad = (-R) % k
    xp = x2 if pad == 0 else jnp.concatenate(
        [x2, jnp.zeros((pad, D), x2.dtype)], axis=0)
    xf = xp.reshape((R + pad) // k, k * D)
    out = _launch_vector(xf, jnp.tile(b_vec, k).reshape(1, k * D))
    out = out.reshape(R + pad, D)
    return out[:R] if pad else out


@jax.jit
def swish(x, beta):
    """Pallas Swish matching the PyTorch module's forward pass."""
    beta = jnp.asarray(beta)
    sub = _sublane_quantum(x.dtype)

    # ---- dim <= 0: scalar beta, broadcast everywhere (2-D or 4-D input) ----
    if beta.size == 1:
        rows, cols = _scalar_layout(x.shape, sub)
        out = _launch_scalar(x.reshape(rows, cols),
                             beta.reshape(1).astype(jnp.float32))
        return out.reshape(x.shape)

    # ---- 2-D: per-feature beta[None, :] ------------------------------------
    if x.ndim == 2:
        b_vec = beta.reshape(-1).astype(x.dtype)           # (D,)
        return _swish_rows_features(x, b_vec)

    # ---- 4-D NCHW: per-channel beta[None, :, None, None] -------------------
    if x.ndim != 4:
        raise NotImplementedError(
            f"Swish Pallas kernel supports 2-D or 4-D inputs for vector beta "
            f"(got ndim={x.ndim}).")
    N, C, H, W = x.shape
    HW = H * W
    beta_c = beta.reshape(-1).astype(x.dtype)               # (C,)

    if N < sub:
        # Restore sublane density for small batch: (N, C*H*W) -> (N*g, (C/g)*H*W)
        # with g the smallest divisor of C giving >= `sub` rows, but only if it
        # keeps columns lane-dense (multiple of 128) and lcm(sub, g) <= N*g so
        # beta expansion stays tile-aligned.
        for g in range(2, C + 1):
            if C % g != 0 or N * g < sub:
                continue
            if ((C // g) * HW) % _LANE != 0:
                continue
            if (sub * g) // math.gcd(sub, g) > N * g:
                continue
            cols = (C // g) * HW
            x2 = x.reshape(N * g, cols)
            b_grp = jnp.repeat(beta_c, HW).reshape(g, cols)
            return _launch_vector(x2, b_grp).reshape(N, C, H, W)

    # Generic path: flatten channels + spatial into the feature axis; the
    # lane-dense fold in _swish_rows_features also covers C*H*W % 128 != 0
    # (e.g. 7x7 feature maps).
    b_vec = jnp.repeat(beta_c, HW)                           # (C*H*W,)
    out = _swish_rows_features(x.reshape(N, C * HW), b_vec)
    return out.reshape(N, C, H, W)


def _reference(x, beta):
    if x.ndim == 2:
        return x * jax.nn.sigmoid(beta[None, :] * x)
    return x * jax.nn.sigmoid(beta[None, :, None, None] * x)


if __name__ == "__main__":
    key = jax.random.PRNGKey(0)
    k1, k2 = jax.random.split(key)

    # ---- 4-D case (NCHW): Swish(dim=4) -> per-channel beta (learnable).
    N, C, H, W = 2, 4, 16, 16
    x4 = jax.random.normal(k1, (N, C, H, W), dtype=jnp.float32)
    beta4 = jnp.linspace(0.5, 1.5, C, dtype=jnp.float32)     # non-uniform: checks alignment
    y4 = jax.block_until_ready(swish(x4, beta4))
    assert y4.shape == x4.shape
    assert jnp.allclose(y4, _reference(x4, beta4), atol=1e-5, rtol=1e-5), "4-D mismatch"

    # ---- 2-D case: Swish(dim=32) -> per-feature beta.
    B, D = 8, 32
    x2 = jax.random.normal(k2, (B, D), dtype=jnp.float32)
    beta2 = jnp.linspace(0.5, 1.5, D, dtype=jnp.float32)
    y2 = jax.block_until_ready(swish(x2, beta2))
    assert y2.shape == x2.shape
    assert jnp.allclose(y2, _reference(x2, beta2), atol=1e-5, rtol=1e-5), "2-D mismatch"

    # ---- dim <= 0 path: beta = ones((1,)) (non-learnable scalar), SMEM route.
    beta1 = jnp.ones((1,), dtype=jnp.float32)
    y1 = jax.block_until_ready(swish(x4, beta1))
    assert jnp.allclose(y1, _reference(x4, beta1), atol=1e-5, rtol=1e-5), "scalar-beta mismatch"

    print("KERNEL_OK")
</pallas_src>

<mosaic_0001>
module attributes {stable_mosaic.version = 11 : i64} {
  func.func @_swish_vec_kernel(%arg0: i32, %arg1: i32, %arg2: memref<8x256xf32, #tpu.memory_space<vmem>>, %arg3: memref<8x256xf32, #tpu.memory_space<vmem>>, %arg4: memref<8x256xf32, #tpu.memory_space<vmem>>) attributes {dimension_semantics = [#tpu.dimension_semantics<parallel>, #tpu.dimension_semantics<parallel>], iteration_bounds = array<i64: 1, 1>, scalar_prefetch = 0 : i64, scratch_operands = 0 : i64, tpu.core_type = #tpu.core_type<tc>, window_params = [{transform_indices = @transform_0, window_bounds = array<i64: 8, 256>}, {transform_indices = @transform_1, window_bounds = array<i64: 8, 256>}, {transform_indices = @transform_2, window_bounds = array<i64: 8, 256>}]} {
    %c0 = arith.constant 0 : index
    %c0_0 = arith.constant 0 : index
    %0 = vector.load %arg2[%c0, %c0_0] : memref<8x256xf32, #tpu.memory_space<vmem>>, vector<8x256xf32>
    %c0_1 = arith.constant 0 : index
    %c0_2 = arith.constant 0 : index
    %1 = vector.load %arg3[%c0_1, %c0_2] : memref<8x256xf32, #tpu.memory_space<vmem>>, vector<8x256xf32>
    %2 = arith.mulf %1, %0 : vector<8x256xf32>
    %3 = arith.negf %2 : vector<8x256xf32>
    %4 = math.exp %3 : vector<8x256xf32>
    %cst = arith.constant 1.000000e+00 : f32
    %5 = vector.broadcast %cst : f32 to vector<8x256xf32>
    %6 = arith.addf %5, %4 : vector<8x256xf32>
    %7 = arith.divf %5, %6 : vector<8x256xf32>
    %8 = arith.mulf %0, %7 : vector<8x256xf32>
    %c0_3 = arith.constant 0 : index
    %c0_4 = arith.constant 0 : index
    %9 = vector.load %arg4[%c0_3, %c0_4] : memref<8x256xf32, #tpu.memory_space<vmem>>, vector<8x256xf32>
    tpu.vector_store %arg4[%c0_3, %c0_4], %8 {strides = array<i32>} : memref<8x256xf32, #tpu.memory_space<vmem>>, vector<8x256xf32>,
    return
  }
  func.func @transform_0(%arg0: i32, %arg1: i32) -> (i32, i32) {
    %c0_i32 = arith.constant 0 : i32
    return %arg1, %arg0 : i32, i32
  }
  func.func @transform_1(%arg0: i32, %arg1: i32) -> (i32, i32) {
    %c0_i32 = arith.constant 0 : i32
    %c0_i32_0 = arith.constant 0 : i32
    return %c0_i32, %arg0 : i32, i32
  }
  func.func @transform_2(%arg0: i32, %arg1: i32) -> (i32, i32) {
    %c0_i32 = arith.constant 0 : i32
    return %arg1, %arg0 : i32, i32
  }
}

</mosaic_0001>

<bundles_post_ra>
// kernel: swish.1
= control target key start
LH: loop header
LB: loop body
LE: loop exit
PB: predicated region body
PF: predicated region fallthrough
CT: control target
= control target key end

     0   :  { %s80_s0 = inlined_call_operand.vmem [shape: f32[8,256], index: 0, kind: input, shape index: {}]   ;;  %s81_s1 = inlined_call_operand.vmem [shape: f32[8,256], index: 1, kind: input, shape index: {}]   ;;  %s82_s2 = inlined_call_operand.vmem [shape: f32[8,256], index: 2, kind: output, shape index: {}]  }
   0x1   :  { %v11_v0 = vld [vmem:[%s80_s0] sm:$0xff]  ;;  %v12_v2 = vld [vmem:[%s80_s0 + $0x8] sm:$0xff] }
   0x2   :  { %v13_v1 = vld [vmem:[%s81_s1] sm:$0xff]  ;;  %v14_v4 = vld [vmem:[%s81_s1 + $0x8] sm:$0xff] }
   0x3   :  { %v15_v3 = vmul.f32 %v13_v1, %v11_v0  ;;  %v16_v5 = vmul.f32 %v14_v4, %v12_v2 }
   0x5   :  { %v37_v6 = vmul.f32 -1.442695, %v15_v3  ;;  %v38_v7 = vmul.f32 -1.442695, %v16_v5 }
   0x7   :  { %39 = vpow2.f32 %v37_v6 }
   0x8   :  { %41 = vpow2.f32 %v38_v7 }
  0x14   :  { %v40_v8 = vpop.eup %39 }
  0x15   :  { %v42_v9 = vpop.eup %41  ;;  %v23_v10 = vadd.f32 1.0, %v40_v8 }
  0x16   :  { %v24_v11 = vadd.f32 1.0, %v42_v9 }
  0x17   :  { %43 = vrcp.f32 %v23_v10 }
  0x18   :  { %45 = vrcp.f32 %v24_v11 }
  0x24   :  { %v44_v12 = vpop.eup %43 }
  0x25   :  { %v46_v13 = vpop.eup %45  ;;  %v29_v14 = vmul.f32 %v44_v12, %v11_v0 }
  0x26   :  { %v30_v15 = vmul.f32 %v46_v13, %v12_v2 }
  0x27   :  { %31 = vst [vmem:[%s82_s2] sm:$0xff] %v29_v14 }
  0x28   :  { %32 = vst [vmem:[%s82_s2 + $0x8] sm:$0xff] %v30_v15 }

</bundles_post_ra>
